<compile_context>
chip_gen: v7x
topology: tpu7x:2x2x1
jax: 0.10.0
libtpu: 0.0.40
codegen_flags: <defaults>
</compile_context>

<pallas_src>
import functools

import jax
import jax.numpy as jnp
from jax.experimental import pallas as pl
from jax.experimental.pallas import tpu as pltpu


def _fused_kernel(x_ref, w_ref, b_ref, o_ref):
    """o = x @ W + b for one (TM, C_eff) row tile.

    x_ref : (TM, C_eff)     input rows, native dtype (bf16 or f32)
    w_ref : (C_eff, C_eff)  fused weight (resident across all row tiles)
    b_ref : (1, C_eff)      fused bias, f32
    o_ref : (TM, C_eff)     output (f32 by default, matching the module's .float())
    """
    y = jnp.dot(x_ref[...], w_ref[...], preferred_element_type=jnp.float32)
    o_ref[...] = (y + b_ref[...]).astype(o_ref.dtype)


def _resident_spec(block_shape, index_map):
    """BlockSpec for an operand whose index_map is constant across the grid:
    request a single VMEM buffer (no useless double-buffering). Returns
    (spec, buffer_count) so VMEM sizing can account for what was actually
    requested; falls back to the default pipeline if the kwarg is unavailable."""
    try:
        return pl.BlockSpec(block_shape, index_map,
                            pipeline_mode=pl.Buffered(1)), 1
    except (TypeError, AttributeError):
        return pl.BlockSpec(block_shape, index_map), 2


def _choose_row_tile(m_rows, c_eff, in_itemsize, out_itemsize, w_itemsize, w_bufs):
    """Row tile sized by total bytes moved per grid step (double-buffered input
    and output tiles plus the resident weight) against ~half of the physical
    VMEM of this generation (~32 MiB on v7x, ~64 MiB on v5e/v6e), capped at
    8192 rows (diminishing returns once per-step DMA >> ~0.35us step overhead)
    and at ceil(m_rows/2) so >= 2 grid steps remain for v7x megacore sharding."""
    if m_rows <= 512:
        return m_rows                               # single block == full dim, always legal
    try:
        vmem_cap = pltpu.get_tpu_info().vmem_capacity_bytes
    except Exception:                               # not available -> assume v7x-sized VMEM
        vmem_cap = 64 << 20
    budget = vmem_cap // 2

    resident = w_bufs * (c_eff * c_eff * w_itemsize + c_eff * 4)   # weight (+bias)
    per_row = 2 * c_eff * (in_itemsize + out_itemsize)             # 2x in + 2x out buffers
    tm = (budget - resident) // max(per_row, 1)
    tm = min(tm, 8192)                              # ~6-12 MB/step: step overhead < ~15%
    tm = min(tm, -(-m_rows // 2))                   # keep >= 2 grid steps (2 TCs on v7x)
    tm = max(tm, 256)
    return max((tm // 8) * 8, 8)                    # sublane-aligned


@functools.partial(jax.jit, static_argnames=("groups", "out_dtype"))
def repadapter_forward(x, conv_a_w, conv_a_b, conv_b_w, conv_b_b, groups,
                       out_dtype=jnp.float32):
    """x: (B, N, C); PyTorch-shaped params:
         conv_a_w: (H, C, 1), conv_a_b: (H,)
         conv_b_w: (C, H//G, 1), conv_b_b: (C,)
       returns (B, N, C) in out_dtype (float32 by default, matching .float())."""
    B, N, C = x.shape
    H = conv_a_w.shape[0]
    Cg = C // groups
    M = B * N

    # ---- plain-JAX glue: fold conv_A -> dropout(id) -> conv_B into one matmul ----
    wa = jnp.transpose(conv_a_w[:, :, 0]).astype(jnp.float32)            # (C, H)
    ba = conv_a_b.reshape(1, H).astype(jnp.float32)                      # (1, H)
    wb_blocks = [
        jnp.transpose(conv_b_w[g * Cg:(g + 1) * Cg, :, 0])               # (Hg, Cg)
        for g in range(groups)
    ]
    wb = jax.scipy.linalg.block_diag(*wb_blocks).astype(jnp.float32)     # (H, C)
    bb = conv_b_b.reshape(1, C).astype(jnp.float32)                      # (1, C)

    w_fused = wa @ wb                                                    # (C, C)
    b_fused = ba @ wb + bb                                               # (1, C)
    # TODO(synk): nn.Dropout(0.1) is identity at inference; the weight fusion
    # above is only valid in eval mode (training-mode mask not implemented).

    x2d = x.reshape(M, C)

    # ---- lane-density packing: fold P rows into one 128-wide lane row ----
    if C < 128 and 128 % C == 0:
        P = 128 // C
        m_pad = (-M) % P
        if m_pad:
            # Pad a few rows so the free row-major re-view to (M/P, P*C) exists;
            # padded rows compute garbage that is sliced off below.
            x2d = jnp.pad(x2d, ((0, m_pad), (0, 0)))
        x_in = x2d.reshape((M + m_pad) // P, P * C)                      # free in row-major HBM
        w_in = jax.scipy.linalg.block_diag(*([w_fused] * P))             # (128, 128)
        b_in = jnp.tile(b_fused, (1, P))                                 # (1, 128)
    else:
        # TODO(synk): for C that neither reach 128 nor divide it, the output
        # last dim < 128 lowers to masked stores; zero-padding C up to 128
        # would restore lane density at the cost of an extra input copy.
        P = 1
        m_pad = 0
        x_in, w_in, b_in = x2d, w_fused, b_fused

    m_rows, c_eff = x_in.shape

    # Feed the MXU in the input's native dtype (bf16 halves HBM read bytes);
    # accumulation stays f32 via preferred_element_type.
    if x_in.dtype == jnp.bfloat16:
        w_in = w_in.astype(jnp.bfloat16)

    out_dt = jnp.dtype(out_dtype)
    in_isz = x_in.dtype.itemsize
    w_isz = w_in.dtype.itemsize

    # Resident (constant index_map) operands: single-buffer them.
    w_spec, w_bufs = _resident_spec((c_eff, c_eff), lambda i: (0, 0))
    b_spec, _ = _resident_spec((1, c_eff), lambda i: (0, 0))

    tm = _choose_row_tile(m_rows, c_eff, in_isz, out_dt.itemsize, w_isz, w_bufs)
    grid = (pl.cdiv(m_rows, tm),)

    # VMEM limit from the actual footprint (+25% / +2 MiB headroom), not a flat
    # 48 MiB — keeps v7x's 64 MiB physical VMEM free for co-scheduled fusions.
    vmem_need = (2 * tm * c_eff * in_isz
                 + 2 * tm * c_eff * out_dt.itemsize
                 + w_bufs * (c_eff * c_eff * w_isz + c_eff * 4))
    vmem_limit = int(min(max(vmem_need + vmem_need // 4 + (2 << 20), 8 << 20),
                         100 << 20))

    out2d = pl.pallas_call(
        _fused_kernel,
        out_shape=jax.ShapeDtypeStruct((m_rows, c_eff), out_dt),
        grid=grid,
        in_specs=[
            pl.BlockSpec((tm, c_eff), lambda i: (i, 0)),      # row tile of x
            w_spec,                                           # fused weight (resident)
            b_spec,                                           # fused bias (resident)
        ],
        out_specs=pl.BlockSpec((tm, c_eff), lambda i: (i, 0)),
        compiler_params=pltpu.CompilerParams(
            dimension_semantics=("parallel",),   # shard row tiles across v7x's 2 TCs
            vmem_limit_bytes=vmem_limit,
        ),
    )(x_in, w_in, b_in)

    # Undo packing / padding (free row-major reshape; slice is a no-op if m_pad == 0).
    return out2d.reshape(-1, C)[:M].reshape(B, N, C)


def _reference_forward(x, conv_a_w, conv_a_b, conv_b_w, conv_b_b, groups):
    """Pure-JAX reference mirroring the PyTorch grouped 1x1 convs directly."""
    B, N, C = x.shape
    H = conv_a_w.shape[0]
    Hg = H // groups
    Cg = C // groups
    xf = x.astype(jnp.float32)
    # conv_A
    h = jnp.einsum("bnc,hc->bnh", xf, conv_a_w[:, :, 0].astype(jnp.float32))
    h = h + conv_a_b.astype(jnp.float32)[None, None, :]
    # conv_B, grouped, done group-by-group
    outs = []
    for g in range(groups):
        hg = h[:, :, g * Hg:(g + 1) * Hg]                              # (B, N, Hg)
        wg = conv_b_w[g * Cg:(g + 1) * Cg, :, 0].astype(jnp.float32)   # (Cg, Hg)
        outs.append(jnp.einsum("bnh,ch->bnc", hg, wg))
    y = jnp.concatenate(outs, axis=-1) + conv_b_b.astype(jnp.float32)[None, None, :]
    return y


if __name__ == "__main__":
    key = jax.random.PRNGKey(0)
    kx, ka, kab, kb, kbb = jax.random.split(key, 5)

    def make_params(C, H, G):
        # Nonzero deterministic values (the module's own init zeroes conv_B,
        # which would make the output trivially zero).
        conv_a_w = jax.random.normal(ka, (H, C, 1), dtype=jnp.float32) * 0.1
        conv_a_b = jax.random.normal(kab, (H,), dtype=jnp.float32) * 0.1
        conv_b_w = jax.random.normal(kb, (C, H // G, 1), dtype=jnp.float32) * 0.1
        conv_b_b = jax.random.normal(kbb, (C,), dtype=jnp.float32) * 0.1
        return conv_a_w, conv_a_b, conv_b_w, conv_b_b

    # 1) small f32, lane-packed path (C=32 -> 4 rows packed per 128-wide lane row)
    B, N, C, H, G = 2, 8, 32, 8, 2
    params = make_params(C, H, G)
    x = jax.random.normal(kx, (B, N, C), dtype=jnp.float32)
    out = jax.block_until_ready(repadapter_forward(x, *params, G))
    ref = _reference_forward(x, *params, G)
    assert out.shape == (B, N, C) and out.dtype == jnp.float32
    assert jnp.allclose(out, ref, atol=1e-5, rtol=1e-5), "f32 packed path mismatch"

    # 2) bf16 input (bf16 x bf16 matmul, f32 accumulate) — looser tolerance
    x_bf = x.astype(jnp.bfloat16)
    out_bf = jax.block_until_ready(repadapter_forward(x_bf, *params, G))
    ref_bf = _reference_forward(x_bf, *params, G)
    assert out_bf.dtype == jnp.float32
    assert jnp.allclose(out_bf, ref_bf, atol=2e-2, rtol=2e-2), "bf16 input mismatch"

    # 3) optional bf16 output (deferred .float() for bandwidth-bound consumers)
    out_b16 = jax.block_until_ready(
        repadapter_forward(x, *params, G, out_dtype=jnp.bfloat16))
    assert out_b16.dtype == jnp.bfloat16
    assert jnp.allclose(out_b16.astype(jnp.float32), ref, atol=2e-2, rtol=2e-2), \
        "bf16 output mismatch"

    # 4) M not divisible by the packing factor + multi-step grid with a partial
    #    final block (exercises row padding and output boundary clipping)
    B2, N2 = 2, 1041                                   # M = 2082, P = 4 -> pad 2 rows
    x2 = jax.random.normal(kx, (B2, N2, C), dtype=jnp.float32)
    out2 = jax.block_until_ready(repadapter_forward(x2, *params, G))
    ref2 = _reference_forward(x2, *params, G)
    assert out2.shape == (B2, N2, C)
    assert jnp.allclose(out2, ref2, atol=1e-5, rtol=1e-5), "padded/partial-block mismatch"

    # 5) non-packed fallback path (C = 128 is already lane-dense)
    C3, H3, G3 = 128, 8, 2
    params3 = make_params(C3, H3, G3)
    x3 = jax.random.normal(kx, (B, N, C3), dtype=jnp.float32)
    out3 = jax.block_until_ready(repadapter_forward(x3, *params3, G3))
    ref3 = _reference_forward(x3, *params3, G3)
    assert jnp.allclose(out3, ref3, atol=1e-5, rtol=1e-5), "C=128 fallback mismatch"

    print("KERNEL_OK")
</pallas_src>

<mosaic_0001>
module attributes {stable_mosaic.version = 11 : i64} {
  func.func @_fused_kernel(%arg0: i32, %arg1: memref<4x128xf32, #tpu.memory_space<vmem>>, %arg2: memref<128x128xf32, #tpu.memory_space<vmem>>, %arg3: memref<1x128xf32, #tpu.memory_space<vmem>>, %arg4: memref<4x128xf32, #tpu.memory_space<vmem>>) attributes {dimension_semantics = [#tpu.dimension_semantics<parallel>], iteration_bounds = array<i64: 1>, scalar_prefetch = 0 : i64, scratch_operands = 0 : i64, tpu.core_type = #tpu.core_type<tc>, window_params = [{transform_indices = @transform_0, window_bounds = array<i64: 4, 128>}, {pipeline_mode = #tpu.pipeline_mode<synchronous>, transform_indices = @transform_1, window_bounds = array<i64: 128, 128>}, {pipeline_mode = #tpu.pipeline_mode<synchronous>, transform_indices = @transform_2, window_bounds = array<i64: 1, 128>}, {transform_indices = @transform_3, window_bounds = array<i64: 4, 128>}]} {
    %c0 = arith.constant 0 : index
    %c0_0 = arith.constant 0 : index
    %0 = vector.load %arg1[%c0, %c0_0] : memref<4x128xf32, #tpu.memory_space<vmem>>, vector<4x128xf32>
    %c0_1 = arith.constant 0 : index
    %c0_2 = arith.constant 0 : index
    %1 = vector.load %arg2[%c0_1, %c0_2] : memref<128x128xf32, #tpu.memory_space<vmem>>, vector<128x128xf32>
    %cst = arith.constant dense<0.000000e+00> : vector<4x128xf32>
    %2 = tpu.matmul %0, %1, %cst {dimension_numbers = #tpu.dot_dimension_numbers<[1], [0], [0], [1], [0, 0, 1, 1], [], []>} : vector<4x128xf32>, vector<128x128xf32>, vector<4x128xf32> -> vector<4x128xf32>
    %c0_3 = arith.constant 0 : index
    %c0_4 = arith.constant 0 : index
    %3 = vector.load %arg3[%c0_3, %c0_4] : memref<1x128xf32, #tpu.memory_space<vmem>>, vector<1x128xf32>
    %4 = vector.broadcast %3 : vector<1x128xf32> to vector<4x128xf32>
    %5 = arith.addf %2, %4 : vector<4x128xf32>
    %c0_5 = arith.constant 0 : index
    %c0_6 = arith.constant 0 : index
    %6 = vector.load %arg4[%c0_5, %c0_6] : memref<4x128xf32, #tpu.memory_space<vmem>>, vector<4x128xf32>
    tpu.vector_store %arg4[%c0_5, %c0_6], %5 {strides = array<i32>} : memref<4x128xf32, #tpu.memory_space<vmem>>, vector<4x128xf32>,
    return
  }
  func.func @transform_0(%arg0: i32) -> (i32, i32) {
    %c0_i32 = arith.constant 0 : i32
    %c0_i32_0 = arith.constant 0 : i32
    return %arg0, %c0_i32 : i32, i32
  }
  func.func @transform_1(%arg0: i32) -> (i32, i32) {
    %c0_i32 = arith.constant 0 : i32
    %c0_i32_0 = arith.constant 0 : i32
    %c0_i32_1 = arith.constant 0 : i32
    return %c0_i32, %c0_i32_0 : i32, i32
  }
  func.func @transform_2(%arg0: i32) -> (i32, i32) {
    %c0_i32 = arith.constant 0 : i32
    %c0_i32_0 = arith.constant 0 : i32
    %c0_i32_1 = arith.constant 0 : i32
    return %c0_i32, %c0_i32_0 : i32, i32
  }
  func.func @transform_3(%arg0: i32) -> (i32, i32) {
    %c0_i32 = arith.constant 0 : i32
    %c0_i32_0 = arith.constant 0 : i32
    return %arg0, %c0_i32 : i32, i32
  }
}

</mosaic_0001>

<bundles_post_ra>
// kernel: repadapter_forward.1
= control target key start
LH: loop header
LB: loop body
LE: loop exit
PB: predicated region body
PF: predicated region fallthrough
CT: control target
= control target key end

     0   :  { %v193_v0 = vmov 0.0|0.0   ;;  %vm194_vm0 = vmmov 0   ;;  %v195_v4 = vmov 0.0   ;;  %s273_s1 = inlined_call_operand.vmem [shape: f32[128,128], index: 1, kind: input, shape index: {}]   ;;  %s274_s0 = inlined_call_operand.vmem [shape: f32[4,128], index: 0, kind: input, shape index: {}]   ;;  %s275_s2 = inlined_call_operand.vmem [shape: f32[1,128], index: 2, kind: input, shape index: {}]   ;;  %s276_s3 = inlined_call_operand.vmem [shape: f32[4,128], index: 3, kind: output, shape index: {}]  }
   0x1   :  { %166 = vmatprep.subr.bf16.mxu0 %v193_v0  ;;  %v15_v1 = vld [vmem:[%s273_s1] sm:$0xff]  ;;  %v16_v2 = vld [vmem:[%s273_s1 + $0x8] sm:$0xff]  ;;  %v17_v3 = vld [vmem:[%s273_s1 + $0x10] sm:$0xff]  ;;  %163 = vmatprep.mubr.msk.f32.mxu0 %vm194_vm0, %v195_v4 }
   0x2   :  { %v167_v5 = vpack.c.bf16 %v16_v2, %v15_v1  ;;  %v18_v6 = vld [vmem:[%s273_s1 + $0x18] sm:$0xff]  ;;  %v19_v8 = vld [vmem:[%s273_s1 + $0x20] sm:$0xff]  ;;  %v20_v9 = vld [vmem:[%s273_s1 + $0x28] sm:$0xff] }
   0x3   :  { %v170_v7 = vpack.c.bf16 %v18_v6, %v17_v3  ;;  %v173_v10 = vpack.c.bf16 %v20_v9, %v19_v8  ;;  %v21_v11 = vld [vmem:[%s273_s1 + $0x30] sm:$0xff]  ;;  %v22_v12 = vld [vmem:[%s273_s1 + $0x38] sm:$0xff]  ;;  %v23_v14 = vld [vmem:[%s273_s1 + $0x40] sm:$0xff] }
   0x4   :  { %168 = vmatpush3.bf16.msra.mxu0 %v167_v5  ;;  %v176_v13 = vpack.c.bf16 %v22_v12, %v21_v11  ;;  %v24_v15 = vld [vmem:[%s273_s1 + $0x48] sm:$0xff]  ;;  %v25_v17 = vld [vmem:[%s273_s1 + $0x50] sm:$0xff]  ;;  %v26_v18 = vld [vmem:[%s273_s1 + $0x58] sm:$0xff] }
   0x5   :  { %169 = vmatprep.subr.bf16.mxu0 %v193_v0  ;;  %v179_v16 = vpack.c.bf16 %v24_v15, %v23_v14  ;;  %v182_v19 = vpack.c.bf16 %v26_v18, %v25_v17  ;;  %v27_v20 = vld [vmem:[%s273_s1 + $0x60] sm:$0xff]  ;;  %v28_v21 = vld [vmem:[%s273_s1 + $0x68] sm:$0xff]  ;;  %v29_v23 = vld [vmem:[%s273_s1 + $0x70] sm:$0xff] }
   0x6   :  { %v185_v22 = vpack.c.bf16 %v28_v21, %v27_v20  ;;  %v30_v24 = vld [vmem:[%s273_s1 + $0x78] sm:$0xff]  ;;  %v14_v26 = vld [vmem:[%s274_s0] sm:$0xf] }
   0x7   :  { %v188_v25 = vpack.c.bf16 %v30_v24, %v29_v23  ;;  %v113_v27 = vld [vmem:[%s275_s2] ss:$0 sm:$0xff] }
   0x8   :  { %171 = vmatpush3.bf16.msra.mxu0 %v170_v7 }
   0x9   :  { %172 = vmatprep.subr.bf16.mxu0 %v193_v0 }
   0xc   :  { %174 = vmatpush3.bf16.msra.mxu0 %v173_v10 }
   0xd   :  { %175 = vmatprep.subr.bf16.mxu0 %v193_v0 }
  0x10   :  { %177 = vmatpush3.bf16.msra.mxu0 %v176_v13 }
  0x11   :  { %178 = vmatprep.subr.bf16.mxu0 %v193_v0 }
  0x14   :  { %180 = vmatpush3.bf16.msra.mxu0 %v179_v16 }
  0x15   :  { %181 = vmatprep.subr.bf16.mxu0 %v193_v0 }
  0x18   :  { %183 = vmatpush3.bf16.msra.mxu0 %v182_v19 }
  0x19   :  { %184 = vmatprep.subr.bf16.mxu0 %v193_v0 }
  0x1c   :  { %186 = vmatpush3.bf16.msra.mxu0 %v185_v22 }
  0x1d   :  { %187 = vmatprep.subr.bf16.mxu0 %v193_v0 }
  0x20   :  { %189 = vmatpush3.bf16.msra.mxu0 %v188_v25 }
  0x23   :  { %164 = vmatmul.mubr.f32.vlgmr.msra.gmra.mrb[0].mxu0 %v14_v26 }
  0xf6   :  { %v104_v28 = vpop.f32.mrb[0].mxu0 }
  0xf7   :  { %v105_v29 = vadd.f32 %v113_v27, %v104_v28  ;;  %v165_v30 = vpop.f32.mrb[1].mxu0 }
  0xf9   :  { %108 = vst [vmem:[%s276_s3] sm:$0xf] %v105_v29 }

</bundles_post_ra>
